<compile_context>
chip_gen: v7x
topology: tpu7x:2x2x1
jax: 0.10.0
libtpu: 0.0.40
codegen_flags: <defaults>
</compile_context>

<pallas_src>
import jax
import jax.numpy as jnp
from jax.experimental import pallas as pl
from jax.experimental.pallas import tpu as pltpu


def _round_up(n, m):
    return (n + m - 1) // m * m


def _prenet_fused_kernel(x_ref, w0_ref, w1_ref, m0_ref, m1_ref, o_ref):
    # x_ref:  (TB, Din_p)   w0_ref: (Din_p, H_p)   w1_ref: (H_p, Dout_p)
    # m0_ref: (TB, H_p)     m1_ref: (TB, Dout_p)   o_ref:  (TB, Dout_p)
    # Masks are pre-scaled inverted-dropout masks: 0.0 (drop) or 2.0 (keep / (1-p)).

    # ----- layer 0: linear (no bias) -> ReLU -> dropout(p=0.5) -----
    h = jnp.dot(x_ref[...], w0_ref[...], preferred_element_type=jnp.float32)
    h = jnp.maximum(h, 0.0)
    h = h * m0_ref[...]

    # ----- layer 1: linear (no bias) -> ReLU -> dropout(p=0.5) -----
    y = jnp.dot(h, w1_ref[...], preferred_element_type=jnp.float32)
    y = jnp.maximum(y, 0.0)
    y = y * m1_ref[...]

    o_ref[...] = y.astype(o_ref.dtype)


def prenet_forward(x, w0, w1, key, *, row_tile=256):
    """Fused 2-layer prenet: dropout(relu(dropout(relu(x@w0))@w1)).

    x : [B, Din] float32
    w0: [Din, H] float32   (already transposed from PyTorch's (out, in) layout)
    w1: [H, Dout] float32
    key: jax PRNG key providing the dropout randomness for this call.
    """
    B, Din = x.shape
    H = w0.shape[1]
    Dout = w1.shape[1]

    # Lane-dense / sublane-aligned padded shapes.
    Din_p = _round_up(Din, 128)
    H_p = _round_up(H, 128)
    Dout_p = _round_up(Dout, 128)
    B_pad = _round_up(max(B, 8), 8)

    # Row tile (multiple of 8); B_pad made divisible by the tile.
    TB = min(_round_up(row_tile, 8), B_pad)
    B_pad = _round_up(B_pad, TB)

    f32 = jnp.float32
    xp = jnp.zeros((B_pad, Din_p), f32).at[:B, :Din].set(x.astype(f32))
    w0p = jnp.zeros((Din_p, H_p), f32).at[:Din, :H].set(w0.astype(f32))
    w1p = jnp.zeros((H_p, Dout_p), f32).at[:H, :Dout].set(w1.astype(f32))

    # Dropout masks (training=True, p=0.5), pre-scaled to {0, 2}.
    k0, k1 = jax.random.split(key)
    m0 = jax.random.bernoulli(k0, 0.5, (B_pad, H_p)).astype(f32) * 2.0
    m1 = jax.random.bernoulli(k1, 0.5, (B_pad, Dout_p)).astype(f32) * 2.0

    grid = (B_pad // TB,)
    out_padded = pl.pallas_call(
        _prenet_fused_kernel,
        out_shape=jax.ShapeDtypeStruct((B_pad, Dout_p), f32),
        grid_spec=pl.GridSpec(
            grid=grid,
            in_specs=[
                pl.BlockSpec((TB, Din_p), lambda i: (i, 0)),      # x rows stream
                pl.BlockSpec((Din_p, H_p), lambda i: (0, 0)),     # w0 resident
                pl.BlockSpec((H_p, Dout_p), lambda i: (0, 0)),    # w1 resident
                pl.BlockSpec((TB, H_p), lambda i: (i, 0)),        # layer-0 mask
                pl.BlockSpec((TB, Dout_p), lambda i: (i, 0)),     # layer-1 mask
            ],
            out_specs=pl.BlockSpec((TB, Dout_p), lambda i: (i, 0)),
        ),
        compiler_params=pltpu.CompilerParams(
            dimension_semantics=("parallel",),   # rows shard across TCs on v7x
        ),
    )(xp, w0p, w1p, m0, m1)

    return out_padded[:B, :Dout]


class DecoderPrenetPallas:
    """JAX/Pallas equivalent of the PyTorch DecoderPrenet module (2 layers)."""

    def __init__(self, in_dim, sizes, key):
        # TODO(synk): fused kernel covers the standard 2-layer prenet; >2 layers
        # would need chained calls or a generalized body.
        assert len(sizes) == 2, "fused prenet kernel expects exactly 2 layers"
        in_sizes = [in_dim] + sizes[:-1]
        self.weights = []  # stored already transposed: (in, out)
        for d_in, d_out in zip(in_sizes, sizes):
            key, sub = jax.random.split(key)
            # Deterministic Xavier-uniform-ish init in PyTorch (out, in) layout.
            bound = (6.0 / (d_in + d_out)) ** 0.5
            w_torch_layout = jax.random.uniform(
                sub, (d_out, d_in), jnp.float32, minval=-bound, maxval=bound
            )
            self.weights.append(w_torch_layout.T)  # (in, out) for the kernel

    def __call__(self, x, dropout_key):
        # Caller supplies a fresh key per forward pass so masks vary per step.
        return prenet_forward(x, self.weights[0], self.weights[1], dropout_key)


if __name__ == "__main__":
    key = jax.random.PRNGKey(0)
    key, xkey, pkey, dkey = jax.random.split(key, 4)

    batch = 8
    in_dim = 32
    sizes = [64, 32]

    x = jax.random.normal(xkey, (batch, in_dim), dtype=jnp.float32)

    prenet = DecoderPrenetPallas(in_dim, sizes, pkey)
    out = prenet(x, dropout_key=dkey)
    out = jax.block_until_ready(out)

    assert out.shape == (batch, sizes[-1]), out.shape
    assert out.dtype == jnp.float32
    # ReLU + inverted dropout output must be non-negative and finite.
    assert bool(jnp.all(out >= 0.0)) and bool(jnp.all(jnp.isfinite(out)))

    # Cross-check against a pure-JAX reference using the exact same masks.
    k0, k1 = jax.random.split(dkey)
    B_pad, H_p, D_p = 8, 128, 128
    m0_full = jax.random.bernoulli(k0, 0.5, (B_pad, H_p)).astype(jnp.float32) * 2.0
    m1_full = jax.random.bernoulli(k1, 0.5, (B_pad, D_p)).astype(jnp.float32) * 2.0
    h_ref = jnp.maximum(x @ prenet.weights[0], 0.0) * m0_full[:batch, : sizes[0]]
    y_ref = jnp.maximum(h_ref @ prenet.weights[1], 0.0) * m1_full[:batch, : sizes[1]]
    assert bool(jnp.allclose(out, y_ref, atol=1e-5, rtol=1e-5))

    print("KERNEL_OK")
</pallas_src>

<mosaic_0001>
module attributes {stable_mosaic.version = 11 : i64} {
  func.func @_prenet_fused_kernel(%arg0: i32, %arg1: memref<8x128xf32, #tpu.memory_space<vmem>>, %arg2: memref<128x128xf32, #tpu.memory_space<vmem>>, %arg3: memref<128x128xf32, #tpu.memory_space<vmem>>, %arg4: memref<8x128xf32, #tpu.memory_space<vmem>>, %arg5: memref<8x128xf32, #tpu.memory_space<vmem>>, %arg6: memref<8x128xf32, #tpu.memory_space<vmem>>) attributes {dimension_semantics = [#tpu.dimension_semantics<parallel>], iteration_bounds = array<i64: 1>, scalar_prefetch = 0 : i64, scratch_operands = 0 : i64, tpu.core_type = #tpu.core_type<tc>, window_params = [{transform_indices = @transform_0, window_bounds = array<i64: 8, 128>}, {pipeline_mode = #tpu.pipeline_mode<synchronous>, transform_indices = @transform_1, window_bounds = array<i64: 128, 128>}, {pipeline_mode = #tpu.pipeline_mode<synchronous>, transform_indices = @transform_2, window_bounds = array<i64: 128, 128>}, {transform_indices = @transform_3, window_bounds = array<i64: 8, 128>}, {transform_indices = @transform_4, window_bounds = array<i64: 8, 128>}, {transform_indices = @transform_5, window_bounds = array<i64: 8, 128>}]} {
    %c0 = arith.constant 0 : index
    %c0_0 = arith.constant 0 : index
    %0 = vector.load %arg1[%c0, %c0_0] : memref<8x128xf32, #tpu.memory_space<vmem>>, vector<8x128xf32>
    %c0_1 = arith.constant 0 : index
    %c0_2 = arith.constant 0 : index
    %1 = vector.load %arg2[%c0_1, %c0_2] : memref<128x128xf32, #tpu.memory_space<vmem>>, vector<128x128xf32>
    %cst = arith.constant dense<0.000000e+00> : vector<8x128xf32>
    %2 = tpu.matmul %0, %1, %cst {dimension_numbers = #tpu.dot_dimension_numbers<[1], [0], [0], [1], [0, 0, 1, 1], [], []>} : vector<8x128xf32>, vector<128x128xf32>, vector<8x128xf32> -> vector<8x128xf32>
    %cst_3 = arith.constant 0.000000e+00 : f32
    %3 = vector.broadcast %cst_3 : f32 to vector<8x128xf32>
    %4 = arith.maximumf %2, %3 : vector<8x128xf32>
    %c0_4 = arith.constant 0 : index
    %c0_5 = arith.constant 0 : index
    %5 = vector.load %arg4[%c0_4, %c0_5] : memref<8x128xf32, #tpu.memory_space<vmem>>, vector<8x128xf32>
    %6 = arith.mulf %4, %5 : vector<8x128xf32>
    %c0_6 = arith.constant 0 : index
    %c0_7 = arith.constant 0 : index
    %7 = vector.load %arg3[%c0_6, %c0_7] : memref<128x128xf32, #tpu.memory_space<vmem>>, vector<128x128xf32>
    %cst_8 = arith.constant dense<0.000000e+00> : vector<8x128xf32>
    %8 = tpu.matmul %6, %7, %cst_8 {dimension_numbers = #tpu.dot_dimension_numbers<[1], [0], [0], [1], [0, 0, 1, 1], [], []>} : vector<8x128xf32>, vector<128x128xf32>, vector<8x128xf32> -> vector<8x128xf32>
    %cst_9 = arith.constant 0.000000e+00 : f32
    %9 = vector.broadcast %cst_9 : f32 to vector<8x128xf32>
    %10 = arith.maximumf %8, %9 : vector<8x128xf32>
    %c0_10 = arith.constant 0 : index
    %c0_11 = arith.constant 0 : index
    %11 = vector.load %arg5[%c0_10, %c0_11] : memref<8x128xf32, #tpu.memory_space<vmem>>, vector<8x128xf32>
    %12 = arith.mulf %10, %11 : vector<8x128xf32>
    %c0_12 = arith.constant 0 : index
    %c0_13 = arith.constant 0 : index
    %13 = vector.load %arg6[%c0_12, %c0_13] : memref<8x128xf32, #tpu.memory_space<vmem>>, vector<8x128xf32>
    tpu.vector_store %arg6[%c0_12, %c0_13], %12 {strides = array<i32>} : memref<8x128xf32, #tpu.memory_space<vmem>>, vector<8x128xf32>,
    return
  }
  func.func @transform_0(%arg0: i32) -> (i32, i32) {
    %c0_i32 = arith.constant 0 : i32
    %c0_i32_0 = arith.constant 0 : i32
    return %arg0, %c0_i32 : i32, i32
  }
  func.func @transform_1(%arg0: i32) -> (i32, i32) {
    %c0_i32 = arith.constant 0 : i32
    %c0_i32_0 = arith.constant 0 : i32
    %c0_i32_1 = arith.constant 0 : i32
    return %c0_i32, %c0_i32_0 : i32, i32
  }
  func.func @transform_2(%arg0: i32) -> (i32, i32) {
    %c0_i32 = arith.constant 0 : i32
    %c0_i32_0 = arith.constant 0 : i32
    %c0_i32_1 = arith.constant 0 : i32
    return %c0_i32, %c0_i32_0 : i32, i32
  }
  func.func @transform_3(%arg0: i32) -> (i32, i32) {
    %c0_i32 = arith.constant 0 : i32
    %c0_i32_0 = arith.constant 0 : i32
    return %arg0, %c0_i32 : i32, i32
  }
  func.func @transform_4(%arg0: i32) -> (i32, i32) {
    %c0_i32 = arith.constant 0 : i32
    %c0_i32_0 = arith.constant 0 : i32
    return %arg0, %c0_i32 : i32, i32
  }
  func.func @transform_5(%arg0: i32) -> (i32, i32) {
    %c0_i32 = arith.constant 0 : i32
    %c0_i32_0 = arith.constant 0 : i32
    return %arg0, %c0_i32 : i32, i32
  }
}

</mosaic_0001>

<bundles_post_ra>
// kernel: tpu_custom_call.1
= control target key start
LH: loop header
LB: loop body
LE: loop exit
PB: predicated region body
PF: predicated region fallthrough
CT: control target
= control target key end

     0   :  { %10 = vsyncpa [#allocation3], 0  ;;  %s674_s0 = inlined_call_operand.hbm [shape: f32[8,128], index: 0, kind: input, shape index: {}]   ;;  %s675_s1 = inlined_call_operand.hbm [shape: f32[128,128], index: 1, kind: input, shape index: {}]   ;;  %s676_s2 = inlined_call_operand.hbm [shape: f32[128,128], index: 2, kind: input, shape index: {}]   ;;  %s677_s3 = inlined_call_operand.vmem [shape: f32[8,128], index: 3, kind: input, shape index: {}]   ;;  %s678_s4 = inlined_call_operand.hbm [shape: f32[8,128], index: 4, kind: input, shape index: {}]   ;;  %s679_s5 = inlined_call_operand.hbm [shape: f32[8,128], index: 5, kind: output, shape index: {}]  }
   0x1   :  { %11 = vsyncpa [#allocation6], 0 }
   0x2   :  { %12 = vsyncpa [#allocation9], 0 }
   0x3   :  { %13 = vsyncpa [#allocation4], 0  ;;  %s549_s18 = smov [#allocation5]   ;;  %s431_s22 = scalar_lea.hbm %s675_s1, 2048 }
   0x4   :  { %s29_s19 = sshll.u32 %s549_s18, 4  ;;  %p432_p0 = scmp.ne.s32.totalorder %s675_s1, %s431_s22  ;;  %s30_s19 = int_to_ptr.vmem [resolvable:$true] %s29_s19 }
   0x5   :  { %p435_p1 = scmp.lt.u32.totalorder %s431_s22, %s675_s1 }
   0x7   :  { %p437_p2 = pnand %p435_p1, %p432_p0 }
   0x9   :  { %440 = shalt.err (!%p437_p2)
}
   0xa   :  { %s441_s27 = scalar_lea.vmem %s30_s19, 2048  ;;  %p446_p4 = scmp.lt.s32.totalorder %s30_s19, %s30_s19 }
   0xb   :  { %p442_p3 = scmp.ne.s32.totalorder %s30_s19, %s441_s27  ;;  %p447_p5 = scmp.lt.s32.totalorder %s441_s27, %s441_s27 }
   0xd   :  { %p448_p6 = por %p447_p5, %p446_p4 }
   0xf   :  { %p449_p7 = pnand %p448_p6, %p442_p3 }
  0x11   :  { %452 = shalt.err (!%p449_p7)
}
  0x12   :  { %s550_s28 = smov 128   ;;  %s551_s29 = smov 8  }
  0x13   :  { %35 = dma.hbm_to_vmem [thread:$0]  %s675_s1, 2048, %s30_s19, [#allocation6], %s550_s28, %s550_s28, %s551_s29  }
  0x14   :  { %s552_s7 = smov [#allocation2]   ;;  %s553_s9 = smov [#allocation7]  }
  0x15   :  { %s20_s8 = sshll.u32 %s552_s7, 4  ;;  %s41_s10 = sshll.u32 %s553_s9, 4  ;;  %s21_s8 = int_to_ptr.vmem [resolvable:$true] %s20_s8  ;;  %s42_s10 = int_to_ptr.vmem [resolvable:$true] %s41_s10 }
  0x16   :  { %s453_s13 = scalar_lea.hbm %s674_s0, 128 }
  0x17   :  { %p454_p8 = scmp.ne.s32.totalorder %s674_s0, %s453_s13  ;;  %p457_p9 = scmp.lt.u32.totalorder %s453_s13, %s674_s0 }
  0x19   :  { %p459_p10 = pnand %p457_p9, %p454_p8 }
  0x1b   :  { %462 = shalt.err (!%p459_p10)
}
  0x1c   :  { %s463_s1 = scalar_lea.vmem %s21_s8, 128  ;;  %p468_p12 = scmp.lt.s32.totalorder %s21_s8, %s21_s8 }
  0x1d   :  { %p464_p11 = scmp.ne.s32.totalorder %s21_s8, %s463_s1  ;;  %p469_p13 = scmp.lt.s32.totalorder %s463_s1, %s463_s1 }
  0x1f   :  { %p470_p0 = por %p469_p13, %p468_p12 }
  0x21   :  { %p471_p1 = pnand %p470_p0, %p464_p11 }
  0x23   :  { %474 = shalt.err (!%p471_p1)
}
  0x24   :  { %23 = dma.hbm_to_vmem [thread:$0]  %s674_s0, 128, %s21_s8, [#allocation3]  }
  0x25   :  { %s475_s22 = scalar_lea.hbm %s676_s2, 2048 }
  0x26   :  { %p476_p2 = scmp.ne.s32.totalorder %s676_s2, %s475_s22  ;;  %p479_p3 = scmp.lt.u32.totalorder %s475_s22, %s676_s2 }
  0x28   :  { %p481_p4 = pnand %p479_p3, %p476_p2 }
  0x2a   :  { %484 = shalt.err (!%p481_p4)
}
  0x2b   :  { %s485_s27 = scalar_lea.vmem %s42_s10, 2048  ;;  %p490_p6 = scmp.lt.s32.totalorder %s42_s10, %s42_s10 }
  0x2c   :  { %p486_p5 = scmp.ne.s32.totalorder %s42_s10, %s485_s27  ;;  %p491_p7 = scmp.lt.s32.totalorder %s485_s27, %s485_s27 }
  0x2e   :  { %p492_p8 = por %p491_p7, %p490_p6 }
  0x30   :  { %p493_p9 = pnand %p492_p8, %p486_p5 }
  0x32   :  { %496 = shalt.err (!%p493_p9)
}
  0x33   :  { %47 = dma.hbm_to_vmem [thread:$0]  %s676_s2, 2048, %s42_s10, [#allocation6], %s550_s28, %s550_s28, %s551_s29  }
  0x34   :  { %s554_s6 = smov [#allocation8]   ;;  %s497_s11 = scalar_lea.hbm %s678_s4, 128 }
  0x35   :  { %s56_s7 = sshll.u32 %s554_s6, 4  ;;  %p498_p10 = scmp.ne.s32.totalorder %s678_s4, %s497_s11  ;;  %s57_s7 = int_to_ptr.vmem [resolvable:$true] %s56_s7 }
  0x36   :  { %p501_p11 = scmp.lt.u32.totalorder %s497_s11, %s678_s4 }
  0x38   :  { %p503_p12 = pnand %p501_p11, %p498_p10 }
  0x3a   :  { %506 = shalt.err (!%p503_p12)
}
  0x3b   :  { %s507_s16 = scalar_lea.vmem %s57_s7, 128  ;;  %p512_p0 = scmp.lt.s32.totalorder %s57_s7, %s57_s7 }
  0x3c   :  { %p508_p13 = scmp.ne.s32.totalorder %s57_s7, %s507_s16  ;;  %p513_p1 = scmp.lt.s32.totalorder %s507_s16, %s507_s16 }
  0x3e   :  { %p514_p2 = por %p513_p1, %p512_p0 }
  0x40   :  { %p515_p3 = pnand %p514_p2, %p508_p13 }
  0x42   :  { %518 = shalt.err (!%p515_p3)
}
  0x43   :  { %59 = dma.hbm_to_vmem [thread:$0]  %s678_s4, 128, %s57_s7, [#allocation9]  }
  0x44   :  { %541 = dma.done.wait [#allocation3], 128  }
  0x45   :  { %542 = vsyncadd [#allocation3], 4294967168 }
  0x46   :  { %543 = dma.done.wait [#allocation6], 4096  }
  0x47   :  { %544 = vsyncadd [#allocation6], 4294963200 }
  0x48   :  { %545 = dma.done.wait [#allocation9], 128  }
  0x49   :  { %546 = vsyncadd [#allocation9], 4294967168  ;;  %v555_v0 = vmov 0.0|0.0   ;;  %vm556_vm0 = vmmov 0   ;;  %v557_v1 = vmov 0.0   ;;  %v73_v2 = vld [vmem:[#allocation5] sm:$0xff] }
  0x4a   :  { %373 = vmatprep.subr.bf16.mxu0 %v555_v0  ;;  %335 = vmatprep.mubr.msk.f32.mxu0 %vm556_vm0, %v557_v1  ;;  %v74_v3 = vld [vmem:[#allocation5 + $0x8] sm:$0xff]  ;;  %v75_v4 = vld [vmem:[#allocation5 + $0x10] sm:$0xff]  ;;  %v76_v6 = vld [vmem:[#allocation5 + $0x18] sm:$0xff]  ;;  %s558_s10 = smov [#allocation10]  }
  0x4b   :  { %397 = vmatprep.subr.bf16.mxu1 %v555_v0  ;;  %370 = vmatprep.mubr.msk.f32.mxu1 %vm556_vm0, %v557_v1  ;;  %v374_v5 = vpack.c.bf16 %v74_v3, %v73_v2  ;;  %v377_v7 = vpack.c.bf16 %v76_v6, %v75_v4  ;;  %v77_v8 = vld [vmem:[#allocation5 + $0x20] sm:$0xff]  ;;  %v78_v9 = vld [vmem:[#allocation5 + $0x28] sm:$0xff]  ;;  %v164_v12 = vld [vmem:[#allocation7 + $0x10] sm:$0xff]  ;;  %s258_s17 = sshll.u32 %s558_s10, 4  ;;  %s259_s17 = int_to_ptr.vmem [resolvable:$true] %s258_s17 }
  0x4c   :  { %v162_v10 = vld [vmem:[#allocation7] sm:$0xff]  ;;  %v163_v11 = vld [vmem:[#allocation7 + $0x8] sm:$0xff]  ;;  %v165_v13 = vld [vmem:[#allocation7 + $0x18] sm:$0xff]  ;;  %v380_v14 = vpack.c.bf16 %v78_v9, %v77_v8  ;;  %s519_s1 = scalar_lea.vmem %s259_s17, 128  ;;  %p524_p5 = scmp.lt.s32.totalorder %s259_s17, %s259_s17 }
  0x4d   :  { %375 = vmatpush3.bf16.msra.mxu0 %v374_v5  ;;  %v398_v15 = vpack.c.bf16 %v163_v11, %v162_v10  ;;  %v79_v16 = vld [vmem:[#allocation5 + $0x30] sm:$0xff]  ;;  %v80_v17 = vld [vmem:[#allocation5 + $0x38] sm:$0xff]  ;;  %v401_v18 = vpack.c.bf16 %v165_v13, %v164_v12  ;;  %v166_v19 = vld [vmem:[#allocation7 + $0x20] sm:$0xff]  ;;  %p520_p4 = scmp.ne.s32.totalorder %s259_s17, %s519_s1  ;;  %p525_p6 = scmp.lt.s32.totalorder %s519_s1, %s519_s1 }
  0x4e   :  { %376 = vmatprep.subr.bf16.mxu0 %v555_v0  ;;  %v167_v20 = vld [vmem:[#allocation7 + $0x28] sm:$0xff]  ;;  %v383_v21 = vpack.c.bf16 %v80_v17, %v79_v16  ;;  %v81_v22 = vld [vmem:[#allocation5 + $0x40] sm:$0xff]  ;;  %v168_v25 = vld [vmem:[#allocation7 + $0x30] sm:$0xff] }
  0x4f   :  { %399 = vmatpush3.bf16.msra.mxu1 %v398_v15  ;;  %v82_v23 = vld [vmem:[#allocation5 + $0x48] sm:$0xff]  ;;  %v404_v24 = vpack.c.bf16 %v167_v20, %v166_v19  ;;  %v169_v26 = vld [vmem:[#allocation7 + $0x38] sm:$0xff]  ;;  %v83_v28 = vld [vmem:[#allocation5 + $0x50] sm:$0xff]  ;;  %p526_p7 = por %p525_p6, %p524_p5 }
  0x50   :  { %400 = vmatprep.subr.bf16.mxu1 %v555_v0  ;;  %v386_v27 = vpack.c.bf16 %v82_v23, %v81_v22  ;;  %v84_v29 = vld [vmem:[#allocation5 + $0x58] sm:$0xff]  ;;  %v407_v30 = vpack.c.bf16 %v169_v26, %v168_v25  ;;  %v170_v31 = vld [vmem:[#allocation7 + $0x40] sm:$0xff]  ;;  %v171_v32 = vld [vmem:[#allocation7 + $0x48] sm:$0xff] }
  0x51   :  { %378 = vmatpush3.bf16.msra.mxu0 %v377_v7  ;;  %v389_v33 = vpack.c.bf16 %v84_v29, %v83_v28  ;;  %v85_v34 = vld [vmem:[#allocation5 + $0x60] sm:$0xff]  ;;  %v86_v35 = vld [vmem:[#allocation5 + $0x68] sm:$0xff]  ;;  %v410_v36 = vpack.c.bf16 %v171_v32, %v170_v31  ;;  %v172_v37 = vld [vmem:[#allocation7 + $0x50] sm:$0xff]  ;;  %p527_p8 = pnand %p526_p7, %p520_p4 }
  0x52   :  { %379 = vmatprep.subr.bf16.mxu0 %v555_v0  ;;  %v173_v38 = vld [vmem:[#allocation7 + $0x58] sm:$0xff]  ;;  %v392_v39 = vpack.c.bf16 %v86_v35, %v85_v34  ;;  %v87_v40 = vld [vmem:[#allocation5 + $0x70] sm:$0xff]  ;;  %v174_v43 = vld [vmem:[#allocation7 + $0x60] sm:$0xff] }
  0x53   :  { %402 = vmatpush3.bf16.msra.mxu1 %v401_v18  ;;  %v88_v41 = vld [vmem:[#allocation5 + $0x78] sm:$0xff]  ;;  %v413_v42 = vpack.c.bf16 %v173_v38, %v172_v37  ;;  %v175_v44 = vld [vmem:[#allocation7 + $0x68] sm:$0xff]  ;;  %v176_v48 = vld [vmem:[#allocation7 + $0x70] sm:$0xff] }
  0x54   :  { %403 = vmatprep.subr.bf16.mxu1 %v555_v0  ;;  %v395_v45 = vpack.c.bf16 %v88_v41, %v87_v40  ;;  %v416_v46 = vpack.c.bf16 %v175_v44, %v174_v43  ;;  %v72_v47 = vld [vmem:[#allocation2] sm:$0xff]  ;;  %v249_v57 = vld [vmem:[#allocation8] sm:$0xff] }
  0x55   :  { %381 = vmatpush3.bf16.msra.mxu0 %v380_v14  ;;  %v177_v49 = vld [vmem:[#allocation7 + $0x78] sm:$0xff] }
  0x56   :  { %382 = vmatprep.subr.bf16.mxu0 %v555_v0  ;;  %v419_v50 = vpack.c.bf16 %v177_v49, %v176_v48  ;;  %v160_v52 = vld [vmem:[%s677_s3] sm:$0xff] }
  0x57   :  { %405 = vmatpush3.bf16.msra.mxu1 %v404_v24 }
  0x58   :  { %406 = vmatprep.subr.bf16.mxu1 %v555_v0 }
  0x59   :  { %384 = vmatpush3.bf16.msra.mxu0 %v383_v21 }
  0x5a   :  { %385 = vmatprep.subr.bf16.mxu0 %v555_v0 }
  0x5b   :  { %408 = vmatpush3.bf16.msra.mxu1 %v407_v30 }
  0x5c   :  { %409 = vmatprep.subr.bf16.mxu1 %v555_v0 }
  0x5d   :  { %387 = vmatpush3.bf16.msra.mxu0 %v386_v27 }
  0x5e   :  { %388 = vmatprep.subr.bf16.mxu0 %v555_v0 }
  0x5f   :  { %411 = vmatpush3.bf16.msra.mxu1 %v410_v36 }
  0x60   :  { %412 = vmatprep.subr.bf16.mxu1 %v555_v0 }
  0x61   :  { %390 = vmatpush3.bf16.msra.mxu0 %v389_v33 }
  0x62   :  { %391 = vmatprep.subr.bf16.mxu0 %v555_v0 }
  0x63   :  { %414 = vmatpush3.bf16.msra.mxu1 %v413_v42 }
  0x64   :  { %415 = vmatprep.subr.bf16.mxu1 %v555_v0 }
  0x65   :  { %393 = vmatpush3.bf16.msra.mxu0 %v392_v39 }
  0x66   :  { %394 = vmatprep.subr.bf16.mxu0 %v555_v0 }
  0x67   :  { %417 = vmatpush3.bf16.msra.mxu1 %v416_v46 }
  0x68   :  { %418 = vmatprep.subr.bf16.mxu1 %v555_v0 }
  0x69   :  { %396 = vmatpush3.bf16.msra.mxu0 %v395_v45 }
  0x6b   :  { %420 = vmatpush3.bf16.msra.mxu1 %v419_v50 }
  0x6c   :  { %336 = vmatmul.mubr.f32.vlgmr.msra.gmra.mrb[0].mxu0 %v72_v47 }
 0x13f   :  { %v155_v51 = vpop.f32.mrb[0].mxu0 }
 0x140   :  { %v159_v53 = vmax.f32 %v155_v51, 0.0  ;;  %v337_v54 = vpop.f32.mrb[1].mxu0 }
 0x142   :  { %v161_v55 = vmul.f32 %v160_v52, %v159_v53 }
 0x144   :  { %371 = vmatmul.mubr.f32.vlgmr.msra.gmra.mrb[0].mxu1 %v161_v55 }
 0x217   :  { %v244_v56 = vpop.f32.mrb[0].mxu1 }
 0x218   :  { %v248_v58 = vmax.f32 %v244_v56, 0.0  ;;  %v372_v59 = vpop.f32.mrb[1].mxu1 }
 0x21a   :  { %v250_v60 = vmul.f32 %v249_v57, %v248_v58 }
 0x21c   :  { %251 = vst [vmem:[#allocation10] sm:$0xff] %v250_v60 }
 0x21d   :  { %530 = shalt.err (!%p527_p8)
}
 0x21e   :  { %s531_s19 = scalar_lea.hbm %s679_s5, 128 }
 0x21f   :  { %p532_p9 = scmp.ne.s32.totalorder %s679_s5, %s531_s19  ;;  %p535_p10 = scmp.lt.u32.totalorder %s531_s19, %s679_s5 }
 0x221   :  { %p537_p11 = pnand %p535_p10, %p532_p9 }
 0x223   :  { %540 = shalt.err (!%p537_p11)
}
 0x224   :  { %261 = dma.vmem_to_hbm [thread:$0]  %s259_s17, 128, %s679_s5, [#allocation4]  }
 0x225   :  { %547 = dma.done.wait [#allocation4], 128  }
 0x226   :  { %548 = vsyncadd [#allocation4], 4294967168 }
 0x227   :  { %265 = vsyncpa [#allocation3], 1 }
 0x228   :  { %266 = vsyncpa [#allocation6], 1 }
 0x229   :  { %267 = vsyncpa [#allocation9], 1 }
 0x22a   :  { %268 = vsyncpa [#allocation4], 1 }

</bundles_post_ra>
